<compile_context>
chip_gen: v6e
topology: v6e:2x2x1
jax: 0.10.0
libtpu: 0.0.40
codegen_flags: <defaults>
</compile_context>

<pallas_src>
import functools

import jax
import jax.numpy as jnp
from jax import lax
from jax.experimental import pallas as pl
from jax.experimental.pallas import tpu as pltpu

# MLP architecture from the module: F -> 128 -> 64 -> 32 -> 16 -> 8
NUM_FEATURES = 32          # num_features = train_pairs_data.size(2); small test value
HIDDEN_DIMS = (128, 64, 32, 16, 8)
_BIAS_OFFSETS = tuple(sum(HIDDEN_DIMS[:i]) for i in range(len(HIDDEN_DIMS)))
_BIAS_TOTAL = sum(HIDDEN_DIMS)                      # 248
DEFAULT_MAX_BATCH_TILE = 1024   # rows per input per grid step (both towers run each step)


def _round_up(x, m):
    return (x + m - 1) // m * m


def _pick_batch_tiling(batch, max_tile):
    """Choose (tile_b, b_pad), both multiples of 128.

    Minimizes grid steps first (per-step overhead + MXU weight re-pushes
    dominate this tiny network), then padding.  Caps the tile so the
    'parallel' grid axis has >= 2 steps when the padded batch is >= 256 rows,
    so v7x's two TensorCores can both get work.
    """
    n_min = max(1, _round_up(batch, 128) // 128)     # 128-row groups needed
    cap = max(1, max_tile // 128)
    if n_min >= 2:
        cap = max(1, min(cap, n_min // 2))           # >= 2 grid steps (v7x megacore)
    best = None                                      # (steps, padded_n, units)
    for n in range(n_min, n_min + cap):              # bounded extra padding
        units = max(u for u in range(1, cap + 1) if n % u == 0)
        steps = n // units
        if best is None or (steps, n) < (best[0], best[1]):
            best = (steps, n, units)
    _, n_pad, units = best
    return units * 128, n_pad * 128


def _siamese_kernel(x1_ref, x2_ref, w1_ref, w2_ref, w3_ref, w4_ref, w5_ref,
                    b_ref, o1_ref, o2_ref):
    """Fused shared-tower MLP applied to one batch tile of both inputs.

    x*_ref : [tile_b, F]        batch-major input tiles (caller dtype)
    w*_ref : [out, in]          native PyTorch layout, compute dtype, VMEM-resident
    b_ref  : [sum(out_dims), 1] all 5 biases packed, f32
    o*_ref : [8, tile_b]        feature-major, lane-dense f32 output tiles
    """
    w_refs = (w1_ref, w2_ref, w3_ref, w4_ref, w5_ref)
    for x_ref, o_ref in ((x1_ref, o1_ref), (x2_ref, o2_ref)):
        w0 = w_refs[0][...]
        # Layer 1: contract the last dim of both operands (h = w0 @ x^T); this
        # does the batch-major -> feature-major relayout on-chip (MXU/XLU),
        # not in HBM.  x is cast to the compute dtype on the VPU.
        h = lax.dot_general(
            w0, x_ref[...].astype(w0.dtype),
            dimension_numbers=(((1,), (1,)), ((), ())),
            preferred_element_type=jnp.float32)
        h = h + b_ref[pl.ds(_BIAS_OFFSETS[0], HIDDEN_DIMS[0]), :]
        h = jnp.maximum(h, 0.0)
        for i in range(1, len(w_refs)):
            w = w_refs[i][...]
            h = jnp.dot(w, h.astype(w.dtype), preferred_element_type=jnp.float32)
            h = h + b_ref[pl.ds(_BIAS_OFFSETS[i], HIDDEN_DIMS[i]), :]
            if i < len(w_refs) - 1:
                h = jnp.maximum(h, 0.0)              # ReLU on the VPU (f32)
        o_ref[...] = h.astype(o_ref.dtype)           # lane-dense f32 store


@functools.partial(jax.jit, static_argnames=("max_batch_tile", "compute_dtype"))
def siamese_forward(input1, input2, params, *,
                    max_batch_tile=DEFAULT_MAX_BATCH_TILE,
                    compute_dtype=jnp.bfloat16):
    """Equivalent of SiameseNetwork.forward: shared tower applied to both inputs.

    Both towers are evaluated in one pallas_call; each grid step processes one
    batch tile of each input (no concatenation copy over x).
    """
    assert input1.shape == input2.shape and input1.ndim == 2
    B, F = input1.shape
    out_dim = HIDDEN_DIMS[-1]

    tile_b, b_pad = _pick_batch_tiling(B, max_batch_tile)
    pad = b_pad - B
    x1 = jnp.pad(input1, ((0, pad), (0, 0))) if pad else input1
    x2 = jnp.pad(input2, ((0, pad), (0, 0))) if pad else input2

    # Weights in compute dtype (MXU-native bf16 by default); all five biases
    # packed into one VMEM-resident f32 block with a single constant BlockSpec.
    weights = [w.astype(compute_dtype) for (w, _) in params]
    biases = jnp.concatenate([b for (_, b) in params], axis=0)   # [248, 1] f32

    x_spec = pl.BlockSpec((tile_b, F), lambda j: (j, 0))
    in_specs = [x_spec, x_spec]
    in_specs += [pl.BlockSpec(w.shape, lambda j: (0, 0)) for w in weights]
    in_specs += [pl.BlockSpec(biases.shape, lambda j: (0, 0))]
    out_spec = pl.BlockSpec((out_dim, tile_b), lambda j: (0, j))

    fn = pl.pallas_call(
        _siamese_kernel,
        out_shape=(jax.ShapeDtypeStruct((out_dim, b_pad), jnp.float32),
                   jax.ShapeDtypeStruct((out_dim, b_pad), jnp.float32)),
        grid_spec=pltpu.PrefetchScalarGridSpec(
            num_scalar_prefetch=0,
            grid=(b_pad // tile_b,),
            in_specs=in_specs,
            out_specs=(out_spec, out_spec),
        ),
        compiler_params=pltpu.CompilerParams(
            dimension_semantics=("parallel",),
            vmem_limit_bytes=32 * 1024 * 1024),
    )

    o1t, o2t = fn(x1, x2, *weights, biases)          # each [8, b_pad], f32
    return o1t.T[:B], o2t.T[:B]                      # back to [B, 8]


def init_params(key, num_features=NUM_FEATURES):
    """nn.Linear-style init (uniform +-1/sqrt(fan_in)).

    Weights kept in native PyTorch layout [out, in]; biases stored as [out, 1]
    so they broadcast over the lane (batch) axis inside the kernel.
    """
    dims = (num_features,) + HIDDEN_DIMS
    params = []
    for i in range(len(HIDDEN_DIMS)):
        fan_in, fan_out = dims[i], dims[i + 1]
        key, kw, kb = jax.random.split(key, 3)
        bound = 1.0 / (fan_in ** 0.5)
        w = jax.random.uniform(kw, (fan_out, fan_in), jnp.float32, -bound, bound)
        b = jax.random.uniform(kb, (fan_out, 1), jnp.float32, -bound, bound)
        params.append((w, b))
    return params


def _reference_forward_one(x, params, compute_dtype=jnp.float32):
    """Plain-JAX reference of the shared tower (batch-major), matching the
    kernel's mixed precision: dots in compute_dtype, f32 accum/bias/ReLU."""
    h = x
    for i, (w, b) in enumerate(params):
        h = jnp.dot(h.astype(compute_dtype), w.astype(compute_dtype).T,
                    preferred_element_type=jnp.float32) + b[:, 0]
        if i < len(params) - 1:
            h = jnp.maximum(h, 0.0)
    return h


if __name__ == "__main__":
    key = jax.random.PRNGKey(0)
    k_params, k_x1, k_x2 = jax.random.split(key, 3)

    params = init_params(k_params)

    # Small test consistent with the module: two [B, F] inputs.
    B = 8
    input1 = jax.random.normal(k_x1, (B, NUM_FEATURES), jnp.float32)
    input2 = jax.random.normal(k_x2, (B, NUM_FEATURES), jnp.float32)

    # Default (bf16 compute, f32 accumulation) path.
    out1, out2 = siamese_forward(input1, input2, params)
    jax.block_until_ready((out1, out2))
    assert out1.shape == (B, HIDDEN_DIMS[-1]) and out2.shape == (B, HIDDEN_DIMS[-1])
    assert jnp.allclose(out1, _reference_forward_one(input1, params, jnp.bfloat16),
                        atol=1e-2, rtol=1e-2)
    assert jnp.allclose(out2, _reference_forward_one(input2, params, jnp.bfloat16),
                        atol=1e-2, rtol=1e-2)

    # Full-precision path against the plain-JAX f32 reference.
    o1f, o2f = siamese_forward(input1, input2, params, compute_dtype=jnp.float32)
    jax.block_until_ready((o1f, o2f))
    assert jnp.allclose(o1f, _reference_forward_one(input1, params), atol=1e-3, rtol=1e-3)
    assert jnp.allclose(o2f, _reference_forward_one(input2, params), atol=1e-3, rtol=1e-3)

    # Padded, multi-tile grid path (batch not a multiple of the lane width).
    Bb = 200
    k_y1, k_y2 = jax.random.split(k_x1)
    y1 = jax.random.normal(k_y1, (Bb, NUM_FEATURES), jnp.float32)
    y2 = jax.random.normal(k_y2, (Bb, NUM_FEATURES), jnp.float32)
    p1, p2 = siamese_forward(y1, y2, params, max_batch_tile=128,
                             compute_dtype=jnp.float32)
    jax.block_until_ready((p1, p2))
    assert jnp.allclose(p1, _reference_forward_one(y1, params), atol=1e-3, rtol=1e-3)
    assert jnp.allclose(p2, _reference_forward_one(y2, params), atol=1e-3, rtol=1e-3)

    print("KERNEL_OK")
</pallas_src>

<mosaic_0001>
module attributes {stable_mosaic.version = 11 : i64} {
  func.func @_siamese_kernel(%arg0: i32, %arg1: memref<128x32xf32, #tpu.memory_space<vmem>>, %arg2: memref<128x32xf32, #tpu.memory_space<vmem>>, %arg3: memref<128x32xbf16, #tpu.memory_space<vmem>>, %arg4: memref<64x128xbf16, #tpu.memory_space<vmem>>, %arg5: memref<32x64xbf16, #tpu.memory_space<vmem>>, %arg6: memref<16x32xbf16, #tpu.memory_space<vmem>>, %arg7: memref<8x16xbf16, #tpu.memory_space<vmem>>, %arg8: memref<248x1xf32, #tpu.memory_space<vmem>>, %arg9: memref<8x128xf32, #tpu.memory_space<vmem>>, %arg10: memref<8x128xf32, #tpu.memory_space<vmem>>) attributes {dimension_semantics = [#tpu.dimension_semantics<parallel>], iteration_bounds = array<i64: 1>, scalar_prefetch = 0 : i64, scratch_operands = 0 : i64, tpu.core_type = #tpu.core_type<tc>, window_params = [{transform_indices = @transform_0, window_bounds = array<i64: 128, 32>}, {transform_indices = @transform_1, window_bounds = array<i64: 128, 32>}, {pipeline_mode = #tpu.pipeline_mode<synchronous>, transform_indices = @transform_2, window_bounds = array<i64: 128, 32>}, {pipeline_mode = #tpu.pipeline_mode<synchronous>, transform_indices = @transform_3, window_bounds = array<i64: 64, 128>}, {pipeline_mode = #tpu.pipeline_mode<synchronous>, transform_indices = @transform_4, window_bounds = array<i64: 32, 64>}, {pipeline_mode = #tpu.pipeline_mode<synchronous>, transform_indices = @transform_5, window_bounds = array<i64: 16, 32>}, {pipeline_mode = #tpu.pipeline_mode<synchronous>, transform_indices = @transform_6, window_bounds = array<i64: 8, 16>}, {pipeline_mode = #tpu.pipeline_mode<synchronous>, transform_indices = @transform_7, window_bounds = array<i64: 248, 1>}, {transform_indices = @transform_8, window_bounds = array<i64: 8, 128>}, {transform_indices = @transform_9, window_bounds = array<i64: 8, 128>}]} {
    %c0 = arith.constant 0 : index
    %c0_0 = arith.constant 0 : index
    %0 = vector.load %arg3[%c0, %c0_0] : memref<128x32xbf16, #tpu.memory_space<vmem>>, vector<128x32xbf16>
    %c0_1 = arith.constant 0 : index
    %c0_2 = arith.constant 0 : index
    %1 = vector.load %arg1[%c0_1, %c0_2] : memref<128x32xf32, #tpu.memory_space<vmem>>, vector<128x32xf32>
    %2 = arith.truncf %1 : vector<128x32xf32> to vector<128x32xbf16>
    %cst = arith.constant dense<0.000000e+00> : vector<128x128xf32>
    %3 = tpu.matmul %0, %2, %cst {dimension_numbers = #tpu.dot_dimension_numbers<[1], [1], [0], [0], [0, 0, 1, 0], [], []>} : vector<128x32xbf16>, vector<128x32xbf16>, vector<128x128xf32> -> vector<128x128xf32>
    %c0_3 = arith.constant 0 : index
    %c0_4 = arith.constant 0 : index
    %4 = vector.load %arg8[%c0_3, %c0_4] : memref<248x1xf32, #tpu.memory_space<vmem>>, vector<128x1xf32>
    %5 = vector.broadcast %4 : vector<128x1xf32> to vector<128x128xf32>
    %6 = arith.addf %3, %5 : vector<128x128xf32>
    %cst_5 = arith.constant 0.000000e+00 : f32
    %7 = vector.broadcast %cst_5 : f32 to vector<128x128xf32>
    %8 = arith.maximumf %6, %7 : vector<128x128xf32>
    %c0_6 = arith.constant 0 : index
    %c0_7 = arith.constant 0 : index
    %9 = vector.load %arg4[%c0_6, %c0_7] : memref<64x128xbf16, #tpu.memory_space<vmem>>, vector<64x128xbf16>
    %10 = arith.truncf %8 : vector<128x128xf32> to vector<128x128xbf16>
    %cst_8 = arith.constant dense<0.000000e+00> : vector<64x128xf32>
    %11 = tpu.matmul %9, %10, %cst_8 {dimension_numbers = #tpu.dot_dimension_numbers<[1], [0], [0], [1], [0, 0, 1, 1], [], []>} : vector<64x128xbf16>, vector<128x128xbf16>, vector<64x128xf32> -> vector<64x128xf32>
    %c128 = arith.constant 128 : index
    %c0_9 = arith.constant 0 : index
    %12 = vector.load %arg8[%c128, %c0_9] : memref<248x1xf32, #tpu.memory_space<vmem>>, vector<64x1xf32>
    %13 = vector.broadcast %12 : vector<64x1xf32> to vector<64x128xf32>
    %14 = arith.addf %11, %13 : vector<64x128xf32>
    %cst_10 = arith.constant 0.000000e+00 : f32
    %15 = vector.broadcast %cst_10 : f32 to vector<64x128xf32>
    %16 = arith.maximumf %14, %15 : vector<64x128xf32>
    %c0_11 = arith.constant 0 : index
    %c0_12 = arith.constant 0 : index
    %17 = vector.load %arg5[%c0_11, %c0_12] : memref<32x64xbf16, #tpu.memory_space<vmem>>, vector<32x64xbf16>
    %18 = arith.truncf %16 : vector<64x128xf32> to vector<64x128xbf16>
    %cst_13 = arith.constant dense<0.000000e+00> : vector<32x128xf32>
    %19 = tpu.matmul %17, %18, %cst_13 {dimension_numbers = #tpu.dot_dimension_numbers<[1], [0], [0], [1], [0, 0, 1, 1], [], []>} : vector<32x64xbf16>, vector<64x128xbf16>, vector<32x128xf32> -> vector<32x128xf32>
    %c192 = arith.constant 192 : index
    %c0_14 = arith.constant 0 : index
    %20 = vector.load %arg8[%c192, %c0_14] : memref<248x1xf32, #tpu.memory_space<vmem>>, vector<32x1xf32>
    %21 = vector.broadcast %20 : vector<32x1xf32> to vector<32x128xf32>
    %22 = arith.addf %19, %21 : vector<32x128xf32>
    %cst_15 = arith.constant 0.000000e+00 : f32
    %23 = vector.broadcast %cst_15 : f32 to vector<32x128xf32>
    %24 = arith.maximumf %22, %23 : vector<32x128xf32>
    %c0_16 = arith.constant 0 : index
    %c0_17 = arith.constant 0 : index
    %25 = vector.load %arg6[%c0_16, %c0_17] : memref<16x32xbf16, #tpu.memory_space<vmem>>, vector<16x32xbf16>
    %26 = arith.truncf %24 : vector<32x128xf32> to vector<32x128xbf16>
    %cst_18 = arith.constant dense<0.000000e+00> : vector<16x128xf32>
    %27 = tpu.matmul %25, %26, %cst_18 {dimension_numbers = #tpu.dot_dimension_numbers<[1], [0], [0], [1], [0, 0, 1, 1], [], []>} : vector<16x32xbf16>, vector<32x128xbf16>, vector<16x128xf32> -> vector<16x128xf32>
    %c224 = arith.constant 224 : index
    %c0_19 = arith.constant 0 : index
    %28 = vector.load %arg8[%c224, %c0_19] : memref<248x1xf32, #tpu.memory_space<vmem>>, vector<16x1xf32>
    %29 = vector.broadcast %28 : vector<16x1xf32> to vector<16x128xf32>
    %30 = arith.addf %27, %29 : vector<16x128xf32>
    %cst_20 = arith.constant 0.000000e+00 : f32
    %31 = vector.broadcast %cst_20 : f32 to vector<16x128xf32>
    %32 = arith.maximumf %30, %31 : vector<16x128xf32>
    %c0_21 = arith.constant 0 : index
    %c0_22 = arith.constant 0 : index
    %33 = vector.load %arg7[%c0_21, %c0_22] : memref<8x16xbf16, #tpu.memory_space<vmem>>, vector<8x16xbf16>
    %34 = arith.truncf %32 : vector<16x128xf32> to vector<16x128xbf16>
    %cst_23 = arith.constant dense<0.000000e+00> : vector<8x128xf32>
    %35 = tpu.matmul %33, %34, %cst_23 {dimension_numbers = #tpu.dot_dimension_numbers<[1], [0], [0], [1], [0, 0, 1, 1], [], []>} : vector<8x16xbf16>, vector<16x128xbf16>, vector<8x128xf32> -> vector<8x128xf32>
    %c240 = arith.constant 240 : index
    %c0_24 = arith.constant 0 : index
    %36 = vector.load %arg8[%c240, %c0_24] : memref<248x1xf32, #tpu.memory_space<vmem>>, vector<8x1xf32>
    %37 = vector.broadcast %36 : vector<8x1xf32> to vector<8x128xf32>
    %38 = arith.addf %35, %37 : vector<8x128xf32>
    %c0_25 = arith.constant 0 : index
    %c0_26 = arith.constant 0 : index
    %39 = vector.load %arg9[%c0_25, %c0_26] : memref<8x128xf32, #tpu.memory_space<vmem>>, vector<8x128xf32>
    tpu.vector_store %arg9[%c0_25, %c0_26], %38 {strides = array<i32>} : memref<8x128xf32, #tpu.memory_space<vmem>>, vector<8x128xf32>,
    %c0_27 = arith.constant 0 : index
    %c0_28 = arith.constant 0 : index
    %40 = vector.load %arg3[%c0_27, %c0_28] : memref<128x32xbf16, #tpu.memory_space<vmem>>, vector<128x32xbf16>
    %c0_29 = arith.constant 0 : index
    %c0_30 = arith.constant 0 : index
    %41 = vector.load %arg2[%c0_29, %c0_30] : memref<128x32xf32, #tpu.memory_space<vmem>>, vector<128x32xf32>
    %42 = arith.truncf %41 : vector<128x32xf32> to vector<128x32xbf16>
    %cst_31 = arith.constant dense<0.000000e+00> : vector<128x128xf32>
    %43 = tpu.matmul %40, %42, %cst_31 {dimension_numbers = #tpu.dot_dimension_numbers<[1], [1], [0], [0], [0, 0, 1, 0], [], []>} : vector<128x32xbf16>, vector<128x32xbf16>, vector<128x128xf32> -> vector<128x128xf32>
    %c0_32 = arith.constant 0 : index
    %c0_33 = arith.constant 0 : index
    %44 = vector.load %arg8[%c0_32, %c0_33] : memref<248x1xf32, #tpu.memory_space<vmem>>, vector<128x1xf32>
    %45 = vector.broadcast %44 : vector<128x1xf32> to vector<128x128xf32>
    %46 = arith.addf %43, %45 : vector<128x128xf32>
    %cst_34 = arith.constant 0.000000e+00 : f32
    %47 = vector.broadcast %cst_34 : f32 to vector<128x128xf32>
    %48 = arith.maximumf %46, %47 : vector<128x128xf32>
    %c0_35 = arith.constant 0 : index
    %c0_36 = arith.constant 0 : index
    %49 = vector.load %arg4[%c0_35, %c0_36] : memref<64x128xbf16, #tpu.memory_space<vmem>>, vector<64x128xbf16>
    %50 = arith.truncf %48 : vector<128x128xf32> to vector<128x128xbf16>
    %cst_37 = arith.constant dense<0.000000e+00> : vector<64x128xf32>
    %51 = tpu.matmul %49, %50, %cst_37 {dimension_numbers = #tpu.dot_dimension_numbers<[1], [0], [0], [1], [0, 0, 1, 1], [], []>} : vector<64x128xbf16>, vector<128x128xbf16>, vector<64x128xf32> -> vector<64x128xf32>
    %c128_38 = arith.constant 128 : index
    %c0_39 = arith.constant 0 : index
    %52 = vector.load %arg8[%c128_38, %c0_39] : memref<248x1xf32, #tpu.memory_space<vmem>>, vector<64x1xf32>
    %53 = vector.broadcast %52 : vector<64x1xf32> to vector<64x128xf32>
    %54 = arith.addf %51, %53 : vector<64x128xf32>
    %cst_40 = arith.constant 0.000000e+00 : f32
    %55 = vector.broadcast %cst_40 : f32 to vector<64x128xf32>
    %56 = arith.maximumf %54, %55 : vector<64x128xf32>
    %c0_41 = arith.constant 0 : index
    %c0_42 = arith.constant 0 : index
    %57 = vector.load %arg5[%c0_41, %c0_42] : memref<32x64xbf16, #tpu.memory_space<vmem>>, vector<32x64xbf16>
    %58 = arith.truncf %56 : vector<64x128xf32> to vector<64x128xbf16>
    %cst_43 = arith.constant dense<0.000000e+00> : vector<32x128xf32>
    %59 = tpu.matmul %57, %58, %cst_43 {dimension_numbers = #tpu.dot_dimension_numbers<[1], [0], [0], [1], [0, 0, 1, 1], [], []>} : vector<32x64xbf16>, vector<64x128xbf16>, vector<32x128xf32> -> vector<32x128xf32>
    %c192_44 = arith.constant 192 : index
    %c0_45 = arith.constant 0 : index
    %60 = vector.load %arg8[%c192_44, %c0_45] : memref<248x1xf32, #tpu.memory_space<vmem>>, vector<32x1xf32>
    %61 = vector.broadcast %60 : vector<32x1xf32> to vector<32x128xf32>
    %62 = arith.addf %59, %61 : vector<32x128xf32>
    %cst_46 = arith.constant 0.000000e+00 : f32
    %63 = vector.broadcast %cst_46 : f32 to vector<32x128xf32>
    %64 = arith.maximumf %62, %63 : vector<32x128xf32>
    %c0_47 = arith.constant 0 : index
    %c0_48 = arith.constant 0 : index
    %65 = vector.load %arg6[%c0_47, %c0_48] : memref<16x32xbf16, #tpu.memory_space<vmem>>, vector<16x32xbf16>
    %66 = arith.truncf %64 : vector<32x128xf32> to vector<32x128xbf16>
    %cst_49 = arith.constant dense<0.000000e+00> : vector<16x128xf32>
    %67 = tpu.matmul %65, %66, %cst_49 {dimension_numbers = #tpu.dot_dimension_numbers<[1], [0], [0], [1], [0, 0, 1, 1], [], []>} : vector<16x32xbf16>, vector<32x128xbf16>, vector<16x128xf32> -> vector<16x128xf32>
    %c224_50 = arith.constant 224 : index
    %c0_51 = arith.constant 0 : index
    %68 = vector.load %arg8[%c224_50, %c0_51] : memref<248x1xf32, #tpu.memory_space<vmem>>, vector<16x1xf32>
    %69 = vector.broadcast %68 : vector<16x1xf32> to vector<16x128xf32>
    %70 = arith.addf %67, %69 : vector<16x128xf32>
    %cst_52 = arith.constant 0.000000e+00 : f32
    %71 = vector.broadcast %cst_52 : f32 to vector<16x128xf32>
    %72 = arith.maximumf %70, %71 : vector<16x128xf32>
    %c0_53 = arith.constant 0 : index
    %c0_54 = arith.constant 0 : index
    %73 = vector.load %arg7[%c0_53, %c0_54] : memref<8x16xbf16, #tpu.memory_space<vmem>>, vector<8x16xbf16>
    %74 = arith.truncf %72 : vector<16x128xf32> to vector<16x128xbf16>
    %cst_55 = arith.constant dense<0.000000e+00> : vector<8x128xf32>
    %75 = tpu.matmul %73, %74, %cst_55 {dimension_numbers = #tpu.dot_dimension_numbers<[1], [0], [0], [1], [0, 0, 1, 1], [], []>} : vector<8x16xbf16>, vector<16x128xbf16>, vector<8x128xf32> -> vector<8x128xf32>
    %c240_56 = arith.constant 240 : index
    %c0_57 = arith.constant 0 : index
    %76 = vector.load %arg8[%c240_56, %c0_57] : memref<248x1xf32, #tpu.memory_space<vmem>>, vector<8x1xf32>
    %77 = vector.broadcast %76 : vector<8x1xf32> to vector<8x128xf32>
    %78 = arith.addf %75, %77 : vector<8x128xf32>
    %c0_58 = arith.constant 0 : index
    %c0_59 = arith.constant 0 : index
    %79 = vector.load %arg10[%c0_58, %c0_59] : memref<8x128xf32, #tpu.memory_space<vmem>>, vector<8x128xf32>
    tpu.vector_store %arg10[%c0_58, %c0_59], %78 {strides = array<i32>} : memref<8x128xf32, #tpu.memory_space<vmem>>, vector<8x128xf32>,
    return
  }
  func.func @transform_0(%arg0: i32) -> (i32, i32) {
    %c0_i32 = arith.constant 0 : i32
    %c0_i32_0 = arith.constant 0 : i32
    return %arg0, %c0_i32 : i32, i32
  }
  func.func @transform_1(%arg0: i32) -> (i32, i32) {
    %c0_i32 = arith.constant 0 : i32
    %c0_i32_0 = arith.constant 0 : i32
    return %arg0, %c0_i32 : i32, i32
  }
  func.func @transform_2(%arg0: i32) -> (i32, i32) {
    %c0_i32 = arith.constant 0 : i32
    %c0_i32_0 = arith.constant 0 : i32
    %c0_i32_1 = arith.constant 0 : i32
    return %c0_i32, %c0_i32_0 : i32, i32
  }
  func.func @transform_3(%arg0: i32) -> (i32, i32) {
    %c0_i32 = arith.constant 0 : i32
    %c0_i32_0 = arith.constant 0 : i32
    %c0_i32_1 = arith.constant 0 : i32
    return %c0_i32, %c0_i32_0 : i32, i32
  }
  func.func @transform_4(%arg0: i32) -> (i32, i32) {
    %c0_i32 = arith.constant 0 : i32
    %c0_i32_0 = arith.constant 0 : i32
    %c0_i32_1 = arith.constant 0 : i32
    return %c0_i32, %c0_i32_0 : i32, i32
  }
  func.func @transform_5(%arg0: i32) -> (i32, i32) {
    %c0_i32 = arith.constant 0 : i32
    %c0_i32_0 = arith.constant 0 : i32
    %c0_i32_1 = arith.constant 0 : i32
    return %c0_i32, %c0_i32_0 : i32, i32
  }
  func.func @transform_6(%arg0: i32) -> (i32, i32) {
    %c0_i32 = arith.constant 0 : i32
    %c0_i32_0 = arith.constant 0 : i32
    %c0_i32_1 = arith.constant 0 : i32
    return %c0_i32, %c0_i32_0 : i32, i32
  }
  func.func @transform_7(%arg0: i32) -> (i32, i32) {
    %c0_i32 = arith.constant 0 : i32
    %c0_i32_0 = arith.constant 0 : i32
    %c0_i32_1 = arith.constant 0 : i32
    return %c0_i32, %c0_i32_0 : i32, i32
  }
  func.func @transform_8(%arg0: i32) -> (i32, i32) {
    %c0_i32 = arith.constant 0 : i32
    %c0_i32_0 = arith.constant 0 : i32
    return %c0_i32, %arg0 : i32, i32
  }
  func.func @transform_9(%arg0: i32) -> (i32, i32) {
    %c0_i32 = arith.constant 0 : i32
    %c0_i32_0 = arith.constant 0 : i32
    return %c0_i32, %arg0 : i32, i32
  }
}

</mosaic_0001>

<bundles_post_ra>
// kernel: siamese_forward.1
= control target key start
LH: loop header
LB: loop body
LE: loop exit
PB: predicated region body
PF: predicated region fallthrough
CT: control target
= control target key end

     0   :  { %vm208_vm0 = vcmask 261120   ;;  %v1826_v3 = vmov 0   ;;  %vm573_vm1 = vcmask 523264   ;;  %vm1828_vm2 = vmmov 0   ;;  %s2396_s0 = inlined_call_operand.vmem [shape: f32[128,32], index: 0, kind: input, shape index: {}]   ;;  %s2397_s7 = inlined_call_operand.vmem [shape: f32[248,1], index: 7, kind: input, shape index: {}]   ;;  %s2398_s2 = inlined_call_operand.vmem [shape: bf16[128,32], index: 2, kind: input, shape index: {}]   ;;  %s2399_s1 = inlined_call_operand.vmem [shape: f32[128,32], index: 1, kind: input, shape index: {}]   ;;  %s2400_s3 = inlined_call_operand.vmem [shape: bf16[64,128], index: 3, kind: input, shape index: {}]   ;;  %s2401_s4 = inlined_call_operand.vmem [shape: bf16[32,64], index: 4, kind: input, shape index: {}]   ;;  %s2402_s5 = inlined_call_operand.vmem [shape: bf16[16,32], index: 5, kind: input, shape index: {}]   ;;  %s2403_s6 = inlined_call_operand.vmem [shape: bf16[8,16], index: 6, kind: input, shape index: {}]   ;;  %s2404_s8 = inlined_call_operand.vmem [shape: f32[8,128], index: 8, kind: output, shape index: {0}]   ;;  %s2405_s9 = inlined_call_operand.vmem [shape: f32[8,128], index: 9, kind: output, shape index: {1}]  }
   0x1   :  { %v62_v0 = vld [vmem:[%s2396_s0 + $0x70] sm:$0xff]  ;;  %v63_v1 = vld [vmem:[%s2396_s0 + $0x78] sm:$0xff]  ;;  %v60_v2 = vld [vmem:[%s2396_s0 + $0x60] sm:$0xff]  ;;  %1794 = vset.pattern.permute.xlu0 %v1826_v3  ;;  %1795 = vset.pattern.permute.xlu1 %v1826_v3  ;;  %vm708_vm3 = vcmask 130048  }
   0x2   :  { %v71_v4 = vpack.c.bf16 %v63_v1, %v62_v0  ;;  %v61_v5 = vld [vmem:[%s2396_s0 + $0x68] sm:$0xff]  ;;  %v1896_v8 = vld [vmem:[%s2397_s7 + $0x70] sm:$0xff]  ;;  %v1902_v9 = vld [vmem:[%s2397_s7 + $0x60] sm:$0xff] }
   0x3   :  { %v70_v6 = vpack.c.bf16 %v61_v5, %v60_v2  ;;  %160 = vperm.xlu0 %1794, %v1896_v8   ;;  %v1908_v10 = vld [vmem:[%s2397_s7 + $0x78] sm:$0xff]  ;;  %150 = vperm.xlu1 %1795, %v1902_v9   ;;  %v58_v11 = vld [vmem:[%s2396_s0 + $0x50] sm:$0xff]  ;;  %v1920_v13 = vld [vmem:[%s2397_s7 + $0x68] sm:$0xff] }
   0x4   :  { %1775 = vmatprep.subr.msk.bf16.mxu0 %vm208_vm0, %v71_v4  ;;  %v255_v7 = vsel %vm208_vm0, %v71_v4, 0  ;;  %v59_v12 = vld [vmem:[%s2396_s0 + $0x58] sm:$0xff]  ;;  %v1928_v16 = vld [vmem:[%s2397_s7 + $0x50] sm:$0xff]  ;;  %v1796_v18 = vld [vmem:[%s2398_s2] sm:$0xff]  }
   0x5   :  { %1612 = vmatpush3.bf16.xpose.msra.mxu0 %v255_v7  ;;  %v252_v14 = vsel %vm208_vm0, %v70_v6, 0  ;;  %v69_v15 = vpack.c.bf16 %v59_v12, %v58_v11  ;;  %v1933_v17 = vld [vmem:[%s2397_s7 + $0x58] sm:$0xff]  ;;  %v56_v19 = vld [vmem:[%s2396_s0 + $0x40] sm:$0xff]  ;;  %v57_v20 = vld [vmem:[%s2396_s0 + $0x48] sm:$0xff]  ;;  %1627 = vmatprep.mubr.msk.bf16.mxu0 %vm208_vm0, %v1796_v18 }
   0x6   :  { %1776 = vmatprep.subr.msk.bf16.mxu0 %vm208_vm0, %v70_v6  ;;  %v1950_v21 = vld [vmem:[%s2397_s7 + $0x40] sm:$0xff]  ;;  %v1955_v22 = vld [vmem:[%s2397_s7 + $0x48] sm:$0xff]  ;;  %v68_v24 = vpack.c.bf16 %v57_v20, %v56_v19  ;;  %v1964_v25 = vld [vmem:[%s2397_s7 + $0x30] sm:$0xff] }
   0x7   :  { %165 = vperm.xlu0 %1794, %v1908_v10   ;;  %155 = vperm.xlu1 %1795, %v1920_v13   ;;  %v249_v23 = vsel %vm208_vm0, %v69_v15, 0  ;;  %v1969_v26 = vld [vmem:[%s2397_s7 + $0x38] sm:$0xff]  ;;  %v54_v27 = vld [vmem:[%s2396_s0 + $0x30] sm:$0xff]  ;;  %v1983_v29 = vld [vmem:[%s2397_s7 + $0x20] sm:$0xff] }
   0x8   :  { %v55_v28 = vld [vmem:[%s2396_s0 + $0x38] sm:$0xff]  ;;  %v1988_v30 = vld [vmem:[%s2397_s7 + $0x28] sm:$0xff]  ;;  %v246_v31 = vsel %vm208_vm0, %v68_v24, 0  ;;  %v1996_v33 = vld [vmem:[%s2397_s7 + $0x10] sm:$0xff] }
   0x9   :  { %v67_v32 = vpack.c.bf16 %v55_v28, %v54_v27  ;;  %v2001_v34 = vld [vmem:[%s2397_s7 + $0x18] sm:$0xff]  ;;  %v52_v35 = vld [vmem:[%s2396_s0 + $0x20] sm:$0xff]  ;;  %v53_v37 = vld [vmem:[%s2396_s0 + $0x28] sm:$0xff] }
   0xa   :  { %v2012_v36 = vld [vmem:[%s2397_s7] sm:$0xff]  ;;  %v2020_v38 = vld [vmem:[%s2397_s7 + $0x8] sm:$0xff]  ;;  %v66_v40 = vpack.c.bf16 %v53_v37, %v52_v35  ;;  %v2028_v41 = vld [vmem:[%s2397_s7 + $0xb0] sm:$0xff] }
   0xb   :  { %140 = vperm.xlu0 %1794, %v1928_v16   ;;  %145 = vperm.xlu1 %1795, %v1933_v17   ;;  %v243_v39 = vsel %vm208_vm0, %v67_v32, 0  ;;  %v2033_v42 = vld [vmem:[%s2397_s7 + $0xb8] sm:$0xff]  ;;  %v2041_v43 = vld [vmem:[%s2397_s7 + $0xa0] sm:$0xff]  ;;  %v50_v44 = vld [vmem:[%s2396_s0 + $0x10] sm:$0xff] }
   0xc   :  { %v51_v45 = vld [vmem:[%s2396_s0 + $0x18] sm:$0xff]  ;;  %v2052_v46 = vld [vmem:[%s2397_s7 + $0xa8] sm:$0xff]  ;;  %v240_v47 = vsel %vm208_vm0, %v66_v40, 0  ;;  %v2060_v49 = vld [vmem:[%s2397_s7 + $0x90] sm:$0xff] }
   0xd   :  { %1614 = vmatpush3.bf16.xpose.msra.mxu0 %v252_v14  ;;  %v65_v48 = vpack.c.bf16 %v51_v45, %v50_v44  ;;  %v2065_v50 = vld [vmem:[%s2397_s7 + $0x98] sm:$0xff]  ;;  %v2073_v51 = vld [vmem:[%s2397_s7 + $0x80] sm:$0xff]  ;;  %v49_v53 = vld [vmem:[%s2396_s0 + $0x8] sm:$0xff] }
   0xe   :  { %1777 = vmatprep.subr.msk.bf16.mxu0 %vm208_vm0, %v69_v15  ;;  %v48_v52 = vld [vmem:[%s2396_s0] sm:$0xff]  ;;  %v2084_v54 = vld [vmem:[%s2397_s7 + $0x88] sm:$0xff]  ;;  %v2092_v57 = vld [vmem:[%s2397_s7 + $0xd0] sm:$0xff] }
   0xf   :  { %130 = vperm.xlu0 %1794, %v1950_v21   ;;  %135 = vperm.xlu1 %1795, %v1955_v22   ;;  %v237_v55 = vsel %vm208_vm0, %v65_v48, 0  ;;  %v64_v56 = vpack.c.bf16 %v49_v53, %v48_v52  ;;  %v2097_v58 = vld [vmem:[%s2397_s7 + $0xd8] sm:$0xff]  ;;  %v2105_v59 = vld [vmem:[%s2397_s7 + $0xc0] sm:$0xff]  ;;  %v783_v60 = vld [vmem:[%s2399_s1 + $0x70] sm:$0xff] }
  0x10   :  { %v784_v61 = vld [vmem:[%s2399_s1 + $0x78] sm:$0xff]  ;;  %v2116_v62 = vld [vmem:[%s2397_s7 + $0xc8] sm:$0xff]  ;;  %v2124_v1 = vld [vmem:[%s2397_s7 + $0xe0] sm:$0xff] }
  0x11   :  { %v234_v63 = vsel %vm208_vm0, %v64_v56, 0  ;;  %v792_v0 = vpack.c.bf16 %v784_v61, %v783_v60  ;;  %v2129_v2 = vld [vmem:[%s2397_s7 + $0xe8] sm:$0xff]  ;;  %v781_v3 = vld [vmem:[%s2399_s1 + $0x60] sm:$0xff]  ;;  %v1798_v6 = vld [vmem:[%s2398_s2 + $0x10] sm:$0xff]  }
  0x12   :  { %v782_v4 = vld [vmem:[%s2399_s1 + $0x68] sm:$0xff]  ;;  %v779_v12 = vld [vmem:[%s2399_s1 + $0x50] sm:$0xff]  ;;  %v1800_v14 = vld [vmem:[%s2398_s2 + $0x20] sm:$0xff]  }
  0x13   :  { %120 = vperm.xlu0 %1794, %v1964_v25   ;;  %125 = vperm.xlu1 %1795, %v1969_v26   ;;  %v1797_v5 = vld [vmem:[%s2398_s2 + $0x8] sm:$0xff]   ;;  %v975_v7 = vsel %vm208_vm0, %v792_v0, 0  ;;  %v791_v11 = vpack.c.bf16 %v782_v4, %v781_v3  ;;  %v773_v27 = vld [vmem:[%s2399_s1 + $0x20] sm:$0xff] }
  0x14   :  { %v778_v18 = vld [vmem:[%s2399_s1 + $0x48] sm:$0xff]  ;;  %v769_v35 = vld [vmem:[%s2399_s1] sm:$0xff] }
  0x15   :  { %1616 = vmatpush3.bf16.xpose.msra.mxu0 %v249_v23  ;;  %v1803_v23 = vld [vmem:[%s2398_s2 + $0x38] sm:$0xff]   ;;  %v774_v28 = vld [vmem:[%s2399_s1 + $0x28] sm:$0xff]  ;;  %v1808_v44 = vld [vmem:[%s2398_s2 + $0x20] sm:$0xff]  }
  0x16   :  { %1778 = vmatprep.subr.msk.bf16.mxu0 %vm208_vm0, %v68_v24  ;;  %v1804_v24 = vld [vmem:[%s2398_s2] sm:$0xff]   ;;  %v1809_v45 = vld [vmem:[%s2398_s2 + $0x28] sm:$0xff]  }
  0x17   :  { %110 = vperm.xlu0 %1794, %v1983_v29   ;;  %115 = vperm.xlu1 %1795, %v1988_v30  }
  0x1b   :  { %100 = vperm.xlu0 %1794, %v1996_v33   ;;  %105 = vperm.xlu1 %1795, %v2001_v34  }
  0x1d   :  { %1618 = vmatpush3.bf16.xpose.msra.mxu0 %v246_v31  ;;  %v771_v31 = vld [vmem:[%s2399_s1 + $0x10] sm:$0xff] }
  0x1e   :  { %1779 = vmatprep.subr.msk.bf16.mxu0 %vm208_vm0, %v67_v32  ;;  %v772_v32 = vld [vmem:[%s2399_s1 + $0x18] sm:$0xff] }
  0x1f   :  { %90 = vperm.xlu0 %1794, %v2012_v36   ;;  %95 = vperm.xlu1 %1795, %v2020_v38  }
  0x23   :  { %426 = vperm.xlu0 %1794, %v2028_v41   ;;  %431 = vperm.xlu1 %1795, %v2033_v42  }
  0x25   :  { %1620 = vmatpush3.bf16.xpose.msra.mxu0 %v243_v39 }
  0x26   :  { %1780 = vmatprep.subr.msk.bf16.mxu0 %vm208_vm0, %v66_v40  ;;  %v702_v40 = vld [vmem:[%s2397_s7 + $0xf0] sm:$0xff] }
  0x27   :  { %416 = vperm.xlu0 %1794, %v2041_v43   ;;  %421 = vperm.xlu1 %1795, %v2052_v46  }
  0x2b   :  { %406 = vperm.xlu0 %1794, %v2060_v49   ;;  %411 = vperm.xlu1 %1795, %v2065_v50  }
  0x2d   :  { %1622 = vmatpush3.bf16.xpose.msra.mxu0 %v240_v47  ;;  %v1811_v47 = vld [vmem:[%s2398_s2 + $0x38] sm:$0xff]  }
  0x2e   :  { %1781 = vmatprep.subr.msk.bf16.mxu0 %vm208_vm0, %v65_v48  ;;  %v1812_v48 = vld [vmem:[%s2400_s3] sm:$0xff]  }
  0x2f   :  { %396 = vperm.xlu0 %1794, %v2073_v51   ;;  %401 = vperm.xlu1 %1795, %v2084_v54  }
  0x30   :  { %1659 = vmatprep.mubr.bf16.mxu1 %v1812_v48 }
  0x33   :  { %555 = vperm.xlu0 %1794, %v2092_v57   ;;  %560 = vperm.xlu1 %1795, %v2097_v58  }
  0x35   :  { %1624 = vmatpush3.bf16.xpose.msra.mxu0 %v237_v55 }
  0x36   :  { %1782 = vmatprep.subr.msk.bf16.mxu0 %vm208_vm0, %v64_v56 }
  0x37   :  { %545 = vperm.xlu0 %1794, %v2105_v59   ;;  %550 = vperm.xlu1 %1795, %v2116_v62  }
  0x3b   :  { %641 = vperm.xlu0 %1794, %v2124_v1   ;;  %646 = vperm.xlu1 %1795, %v2129_v2  }
  0x3d   :  { %1626 = vmatpush3.bf16.xpose.msra.mxu0 %v234_v63 }
  0x3e   :  { %1783 = vmatprep.subr.msk.bf16.mxu0 %vm208_vm0, %v792_v0 }
  0x3f   :  { %881 = vperm.xlu0 %1794, %v1896_v8   ;;  %886 = vperm.xlu1 %1795, %v1908_v10   ;;  %v780_v8 = vld [vmem:[%s2399_s1 + $0x58] sm:$0xff] }
  0x40   :  { %v1799_v10 = vld [vmem:[%s2398_s2 + $0x18] sm:$0xff]   ;;  %v790_v15 = vpack.c.bf16 %v780_v8, %v779_v12 }
  0x42   :  { %v969_v19 = vsel %vm208_vm0, %v790_v15, 0 }
  0x43   :  { %871 = vperm.xlu0 %1794, %v1902_v9   ;;  %876 = vperm.xlu1 %1795, %v1920_v13   ;;  %v972_v9 = vsel %vm208_vm0, %v791_v11, 0  ;;  %v777_v13 = vld [vmem:[%s2399_s1 + $0x40] sm:$0xff] }
  0x44   :  { %1628 = vmatmul.mubr.msk.bf16.vlgmr.msra.gmra.mxu0 %vm208_vm0, %v1797_v5  ;;  %v789_v20 = vpack.c.bf16 %v778_v18, %v777_v13 }
  0x45   :  { %1694 = vmatpush3.bf16.xpose.msra.mxu0 %v975_v7  ;;  %1631 = vmatprep.mubr.msk.bf16.mxu0 %vm208_vm0, %v1798_v6 }
  0x46   :  { %1784 = vmatprep.subr.msk.bf16.mxu0 %vm208_vm0, %v791_v11 }
  0x47   :  { %861 = vperm.xlu0 %1794, %v1928_v16   ;;  %866 = vperm.xlu1 %1795, %v1933_v17   ;;  %v1801_v16 = vld [vmem:[%s2398_s2 + $0x28] sm:$0xff]   ;;  %v1802_v17 = vld [vmem:[%s2398_s2 + $0x30] sm:$0xff]  }
  0x4b   :  { %851 = vperm.xlu0 %1794, %v1950_v21   ;;  %856 = vperm.xlu1 %1795, %v1955_v22   ;;  %v775_v21 = vld [vmem:[%s2399_s1 + $0x30] sm:$0xff]  ;;  %v776_v22 = vld [vmem:[%s2399_s1 + $0x38] sm:$0xff] }
  0x4c   :  { %1632 = vmatmul.mubr.msk.bf16.gmra.mxu0 %vm208_vm0, %v1799_v10 }
  0x4d   :  { %1696 = vmatpush3.bf16.xpose.msra.mxu0 %v972_v9  ;;  %1635 = vmatprep.mubr.msk.bf16.mxu0 %vm208_vm0, %v1800_v14 }
  0x4e   :  { %1785 = vmatprep.subr.msk.bf16.mxu0 %vm208_vm0, %v790_v15 }
  0x4f   :  { %841 = vperm.xlu0 %1794, %v1964_v25   ;;  %846 = vperm.xlu1 %1795, %v1969_v26   ;;  %v966_v25 = vsel %vm208_vm0, %v789_v20, 0  ;;  %v788_v26 = vpack.c.bf16 %v776_v22, %v775_v21 }
  0x53   :  { %831 = vperm.xlu0 %1794, %v1983_v29   ;;  %836 = vperm.xlu1 %1795, %v1988_v30   ;;  %v963_v29 = vsel %vm208_vm0, %v788_v26, 0  ;;  %v787_v30 = vpack.c.bf16 %v774_v28, %v773_v27 }
  0x54   :  { %1636 = vmatmul.mubr.msk.bf16.gmra.mxu0 %vm208_vm0, %v1801_v16 }
  0x55   :  { %1698 = vmatpush3.bf16.xpose.msra.mxu0 %v969_v19  ;;  %1639 = vmatprep.mubr.msk.bf16.mxu0 %vm208_vm0, %v1802_v17 }
  0x56   :  { %1786 = vmatprep.subr.msk.bf16.mxu0 %vm208_vm0, %v789_v20 }
  0x57   :  { %821 = vperm.xlu0 %1794, %v1996_v33   ;;  %826 = vperm.xlu1 %1795, %v2001_v34   ;;  %v960_v33 = vsel %vm208_vm0, %v787_v30, 0  ;;  %v786_v34 = vpack.c.bf16 %v772_v32, %v771_v31 }
  0x59   :  { %v957_v37 = vsel %vm208_vm0, %v786_v34, 0 }
  0x5b   :  { %811 = vperm.xlu0 %1794, %v2012_v36   ;;  %816 = vperm.xlu1 %1795, %v2020_v38   ;;  %v770_v36 = vld [vmem:[%s2399_s1 + $0x8] sm:$0xff] }
  0x5c   :  { %1640 = vmatmul.mubr.msk.bf16.gmra.mxu0 %vm208_vm0, %v1803_v23  ;;  %v785_v38 = vpack.c.bf16 %v770_v36, %v769_v35 }
  0x5d   :  { %1700 = vmatpush3.bf16.xpose.msra.mxu0 %v966_v25  ;;  %1709 = vmatprep.mubr.msk.bf16.mxu0 %vm208_vm0, %v1804_v24 }
  0x5e   :  { %1787 = vmatprep.subr.msk.bf16.mxu0 %vm208_vm0, %v788_v26  ;;  %v954_v39 = vsel %vm208_vm0, %v785_v38, 0 }
  0x5f   :  { %1146 = vperm.xlu0 %1794, %v2028_v41   ;;  %1151 = vperm.xlu1 %1795, %v2033_v42   ;;  %v1805_v41 = vld [vmem:[%s2398_s2 + $0x8] sm:$0xff]   ;;  %v1806_v42 = vld [vmem:[%s2398_s2 + $0x10] sm:$0xff]  }
  0x63   :  { %1136 = vperm.xlu0 %1794, %v2041_v43   ;;  %1141 = vperm.xlu1 %1795, %v2052_v46   ;;  %v1807_v43 = vld [vmem:[%s2398_s2 + $0x18] sm:$0xff]   ;;  %v1810_v46 = vld [vmem:[%s2398_s2 + $0x30] sm:$0xff]  }
  0x65   :  { %1702 = vmatpush3.bf16.xpose.msra.mxu0 %v963_v29 }
  0x66   :  { %1788 = vmatprep.subr.msk.bf16.mxu0 %vm208_vm0, %v787_v30 }
  0x67   :  { %1126 = vperm.xlu0 %1794, %v2060_v49   ;;  %1131 = vperm.xlu1 %1795, %v2065_v50  }
  0x6b   :  { %1116 = vperm.xlu0 %1794, %v2073_v51   ;;  %1121 = vperm.xlu1 %1795, %v2084_v54  }
  0x6d   :  { %1704 = vmatpush3.bf16.xpose.msra.mxu0 %v960_v33 }
  0x6e   :  { %1789 = vmatprep.subr.msk.bf16.mxu0 %vm208_vm0, %v786_v34 }
  0x6f   :  { %1275 = vperm.xlu0 %1794, %v2092_v57   ;;  %1280 = vperm.xlu1 %1795, %v2097_v58  }
  0x73   :  { %1265 = vperm.xlu0 %1794, %v2105_v59   ;;  %1270 = vperm.xlu1 %1795, %v2116_v62  }
  0x75   :  { %1706 = vmatpush3.bf16.xpose.msra.mxu0 %v957_v37 }
  0x76   :  { %1790 = vmatprep.subr.msk.bf16.mxu0 %vm208_vm0, %v785_v38 }
  0x77   :  { %1360 = vperm.xlu0 %1794, %v2124_v1   ;;  %1365 = vperm.xlu1 %1795, %v2129_v2  }
  0x7b   :  { %705 = vperm.xlu0 %1794, %v702_v40   ;;  %1424 = vperm.xlu1 %1795, %v702_v40  }
  0x7d   :  { %1708 = vmatpush3.bf16.xpose.msra.mxu0 %v954_v39 }
  0x7e   :  { %v151_v53 = vpop.permute.xlu1 %150  ;;  %v161_v55 = vpop.permute.xlu0 %160 }
  0x82   :  { %v156_v58 = vpop.permute.xlu1 %155  ;;  %v166_v60 = vpop.permute.xlu0 %165 }
  0x84   :  { %1710 = vmatmul.mubr.msk.bf16.vlgmr.msra.gmra.mxu0 %vm208_vm0, %v1805_v41 }
  0x85   :  { %1713 = vmatprep.mubr.msk.bf16.mxu0 %vm208_vm0, %v1806_v42 }
  0x86   :  { %v146_v63 = vpop.permute.xlu1 %145  ;;  %v141_v1 = vpop.permute.xlu0 %140 }
  0x8a   :  { %v136_v4 = vpop.permute.xlu1 %135  ;;  %v131_v7 = vpop.permute.xlu0 %130 }
  0x8c   :  { %1714 = vmatmul.mubr.msk.bf16.gmra.mxu0 %vm208_vm0, %v1807_v43 }
  0x8d   :  { %1717 = vmatprep.mubr.msk.bf16.mxu0 %vm208_vm0, %v1808_v44 }
  0x8e   :  { %v126_v18 = vpop.permute.xlu1 %125  ;;  %v121_v21 = vpop.permute.xlu0 %120 }
  0x92   :  { %v116_v27 = vpop.permute.xlu1 %115  ;;  %v111_v31 = vpop.permute.xlu0 %110 }
  0x94   :  { %1718 = vmatmul.mubr.msk.bf16.gmra.mxu0 %vm208_vm0, %v1809_v45 }
  0x95   :  { %1721 = vmatprep.mubr.msk.bf16.mxu0 %vm208_vm0, %v1810_v46 }
  0x96   :  { %v106_v37 = vpop.permute.xlu1 %105  ;;  %v101_v40 = vpop.permute.xlu0 %100 }
  0x9a   :  { %v96_v46 = vpop.permute.xlu1 %95 }
  0x9c   :  { %1722 = vmatmul.mubr.msk.bf16.gmra.mxu0 %vm208_vm0, %v1811_v47 }
 0x104   :  { %v2287_v49 = vpop.f32.mrf.mxu0 }
 0x105   :  { %v300_v44 = vadd.f32 %v2287_v49, %v101_v40  ;;  %v1813_v49 = vld [vmem:[%s2400_s3 + $0x8] sm:$0xff]  }
 0x106   :  { %v2289_v50 = vpop.f32.mrf.mxu0 }
 0x108   :  { %v1630_v51 = vpop.f32.mrf.mxu0 }
 0x109   :  { %v303_v41 = vadd.f32 %v1630_v51, %v106_v37 }
 0x10a   :  { %v2291_v52 = vpop.f32.mrf.mxu0 }
 0x10b   :  { %v357_v47 = vmax.f32 %v303_v41, 0.0  ;;  %v295_v48 = vadd.f32 %v2291_v52, %v96_v46  ;;  %v1814_v52 = vld [vmem:[%s2400_s3 + $0x10] sm:$0xff]  }
 0x10c   :  { %v1633_v54 = vpop.f32.mrf.mxu0 }
 0x10d   :  { %v316_v32 = vadd.f32 %v1633_v54, %v121_v21  ;;  %v91_v54 = vpop.permute.xlu0 %90  ;;  %v355_v51 = vmax.f32 %v295_v48, 0.0 }
 0x10e   :  { %v307_v56 = vpop.f32.mrf.mxu0 }
 0x10f   :  { %v360_v38 = vmax.f32 %v316_v32, 0.0  ;;  %v308_v39 = vadd.f32 %v307_v56, %v111_v31  ;;  %v292_v56 = vadd.f32 %v2289_v50, %v91_v54  ;;  %v1815_v50 = vld [vmem:[%s2400_s3 + $0x18] sm:$0xff]  }
 0x110   :  { %v1634_v57 = vpop.f32.mrf.mxu0 }
 0x111   :  { %v319_v28 = vadd.f32 %v1634_v57, %v126_v18  ;;  %v358_v45 = vmax.f32 %v308_v39, 0.0 }
 0x112   :  { %v310_v59 = vpop.f32.mrf.mxu0 }
 0x113   :  { %v361_v34 = vmax.f32 %v319_v28, 0.0  ;;  %v311_v35 = vadd.f32 %v310_v59, %v116_v27 }
 0x114   :  { %v1637_v61 = vpop.f32.mrf.mxu0 }
 0x115   :  { %v332_v16 = vadd.f32 %v1637_v61, %v141_v1  ;;  %v381_v42 = vpack.c.bf16 %v361_v34, %v360_v38  ;;  %v359_v43 = vmax.f32 %v311_v35, 0.0  ;;  %v432_v61 = vpop.permute.xlu1 %431  ;;  %v1827_v34 = vmov 0.0  }
 0x116   :  { %v323_v62 = vpop.f32.mrf.mxu0 }
 0x117   :  { %v364_v25 = vmax.f32 %v332_v16, 0.0  ;;  %v324_v26 = vadd.f32 %v323_v62, %v131_v7 }
 0x118   :  { %v1638_v0 = vpop.f32.mrf.mxu0 }
 0x119   :  { %v335_v14 = vadd.f32 %v1638_v0, %v146_v63  ;;  %v362_v33 = vmax.f32 %v324_v26, 0.0  ;;  %v427_v63 = vpop.permute.xlu0 %426 }
 0x11a   :  { %v326_v2 = vpop.f32.mrf.mxu0 }
 0x11b   :  { %v365_v22 = vmax.f32 %v335_v14, 0.0  ;;  %v327_v23 = vadd.f32 %v326_v2, %v136_v4  ;;  %v422_v2 = vpop.permute.xlu1 %421 }
 0x11c   :  { %v1641_v3 = vpop.f32.mrf.mxu0 }
 0x11d   :  { %v348_v6 = vadd.f32 %v1641_v3, %v161_v55  ;;  %v383_v29 = vpack.c.bf16 %v365_v22, %v364_v25  ;;  %v363_v30 = vmax.f32 %v327_v23, 0.0  ;;  %v356_v55 = vmax.f32 %v300_v44, 0.0  ;;  %v417_v4 = vpop.permute.xlu0 %416 }
 0x11e   :  { %v339_v5 = vpop.f32.mrf.mxu0 }
 0x11f   :  { %v340_v12 = vadd.f32 %v339_v5, %v151_v53  ;;  %v368_v9 = vmax.f32 %v348_v6, 0.0  ;;  %v382_v36 = vpack.c.bf16 %v363_v30, %v362_v33  ;;  %v380_v53 = vpack.c.bf16 %v359_v43, %v358_v45  ;;  %v1817_v33 = vld [vmem:[%s2401_s4 + $0x8] sm:$0xff]  }
 0x120   :  { %v1642_v11 = vpop.f32.mrf.mxu0  ;;  %v379_v57 = vpack.c.bf16 %v357_v47, %v356_v55 }
 0x121   :  { %v351_v8 = vadd.f32 %v1642_v11, %v166_v60  ;;  %v366_v17 = vmax.f32 %v340_v12, 0.0  ;;  %v1816_v60 = vld [vmem:[%s2401_s4] sm:$0xff]   ;;  %v412_v11 = vpop.permute.xlu1 %411  ;;  %v407_v14 = vpop.permute.xlu0 %406 }
 0x122   :  { %v342_v10 = vpop.f32.mrf.mxu0 }
 0x123   :  { %v369_v15 = vmax.f32 %v351_v8, 0.0  ;;  %v343_v13 = vadd.f32 %v342_v10, %v156_v58  ;;  %v354_v58 = vmax.f32 %v292_v56, 0.0 }
 0x125   :  { %v367_v19 = vmax.f32 %v343_v13, 0.0  ;;  %v385_v20 = vpack.c.bf16 %v369_v15, %v368_v9  ;;  %v378_v59 = vpack.c.bf16 %v355_v51, %v354_v58  ;;  %v402_v22 = vpop.permute.xlu1 %401  ;;  %v397_v26 = vpop.permute.xlu0 %396 }
 0x127   :  { %v384_v24 = vpack.c.bf16 %v367_v19, %v366_v17  ;;  %1643 = vmatprep.subr.bf16.mxu1 %v385_v20 }
 0x128   :  { %1644 = vmatpush3.bf16.msra.mxu1 %v385_v20 }
 0x129   :  { %1645 = vmatprep.subr.bf16.mxu1 %v384_v24  ;;  %v556_v35 = vpop.permute.xlu0 %555 }
 0x12c   :  { %1646 = vmatpush3.bf16.msra.mxu1 %v384_v24 }
 0x12d   :  { %1647 = vmatprep.subr.bf16.mxu1 %v383_v29  ;;  %v546_v41 = vpop.permute.xlu0 %545 }
 0x130   :  { %1648 = vmatpush3.bf16.msra.mxu1 %v383_v29 }
 0x131   :  { %1649 = vmatprep.subr.bf16.mxu1 %v382_v36 }
 0x134   :  { %1650 = vmatpush3.bf16.msra.mxu1 %v382_v36  ;;  %v561_v36 = vpop.permute.xlu1 %560 }
 0x135   :  { %1651 = vmatprep.subr.bf16.mxu1 %v381_v42 }
 0x138   :  { %1652 = vmatpush3.bf16.msra.mxu1 %v381_v42  ;;  %v551_v43 = vpop.permute.xlu1 %550 }
 0x139   :  { %1653 = vmatprep.subr.bf16.mxu1 %v380_v53 }
 0x13c   :  { %1654 = vmatpush3.bf16.msra.mxu1 %v380_v53 }
 0x13d   :  { %1655 = vmatprep.subr.bf16.mxu1 %v379_v57 }
 0x140   :  { %1656 = vmatpush3.bf16.msra.mxu1 %v379_v57  ;;  %v1818_v57 = vld [vmem:[%s2402_s5] sm:$0xff]  }
 0x141   :  { %1657 = vmatprep.subr.bf16.mxu1 %v378_v59 }
 0x144   :  { %1658 = vmatpush3.bf16.msra.mxu1 %v378_v59  ;;  %v2324_v51 = vpop.f32.mrf.mxu0 }
 0x146   :  { %v2326_v58 = vpop.f32.mrf.mxu0 }
 0x147   :  { %1660 = vmatmul.mubr.bf16.vlgmr.msra.gmra.mxu1 %v1813_v49 }
 0x148   :  { %1663 = vmatprep.mubr.bf16.mxu1 %v1814_v52  ;;  %v2328_v59 = vpop.f32.mrf.mxu0 }
 0x14a   :  { %v2330_v49 = vpop.f32.mrf.mxu0 }
 0x14c   :  { %v2332_v52 = vpop.f32.mrf.mxu0 }
 0x14f   :  { %1664 = vmatmul.mubr.bf16.gmra.mxu1 %v1815_v50  ;;  %v2334_v50 = vpop.f32.mrf.mxu0 }
 0x150   :  { %1675 = vmatprep.mubr.msk.bf16.mxu1 %vm573_vm1, %v1816_v60 }
 0x151   :  { %v1716_v60 = vpop.f32.mrf.mxu0 }
 0x207   :  { %v1661_v62 = vpop.f32.mrf.mxu1 }
 0x208   :  { %v501_v17 = vadd.f32 %v1661_v62, %v407_v14 }
 0x209   :  { %v492_v0 = vpop.f32.mrf.mxu1 }
 0x20a   :  { %v525_v27 = vmax.f32 %v501_v17, 0.0  ;;  %v493_v28 = vadd.f32 %v492_v0, %v397_v26  ;;  %v647_v0 = vpop.permute.xlu1 %646 }
 0x20b   :  { %v1662_v1 = vpop.f32.mrf.mxu1 }
 0x20c   :  { %v504_v15 = vadd.f32 %v1662_v1, %v412_v11  ;;  %v523_v31 = vmax.f32 %v493_v28, 0.0  ;;  %v642_v1 = vpop.permute.xlu0 %641 }
 0x20d   :  { %v495_v3 = vpop.f32.mrf.mxu1 }
 0x20e   :  { %v526_v23 = vmax.f32 %v504_v15, 0.0  ;;  %v496_v24 = vadd.f32 %v495_v3, %v402_v22  ;;  %v887_v3 = vpop.permute.xlu1 %886 }
 0x20f   :  { %v1665_v5 = vpop.f32.mrf.mxu1 }
 0x210   :  { %v517_v7 = vadd.f32 %v1665_v5, %v427_v63  ;;  %v536_v29 = vpack.c.bf16 %v526_v23, %v525_v27  ;;  %v524_v30 = vmax.f32 %v496_v24, 0.0  ;;  %v882_v5 = vpop.permute.xlu0 %881 }
 0x211   :  { %v508_v6 = vpop.f32.mrf.mxu1 }
 0x212   :  { %v509_v8 = vadd.f32 %v508_v6, %v417_v4  ;;  %v529_v13 = vmax.f32 %v517_v7, 0.0  ;;  %v535_v32 = vpack.c.bf16 %v524_v30, %v523_v31  ;;  %v877_v7 = vpop.permute.xlu1 %876 }
 0x213   :  { %v1666_v12 = vpop.f32.mrf.mxu1 }
 0x214   :  { %v520_v10 = vadd.f32 %v1666_v12, %v432_v61  ;;  %v527_v19 = vmax.f32 %v509_v8, 0.0  ;;  %v2336_v61 = vpop.f32.mrf.mxu0  ;;  %v872_v11 = vpop.permute.xlu0 %871 }
 0x215   :  { %v511_v9 = vpop.f32.mrf.mxu1 }
 0x216   :  { %v530_v18 = vmax.f32 %v520_v10, 0.0  ;;  %v512_v16 = vadd.f32 %v511_v9, %v422_v2  ;;  %v1719_v62 = vpop.f32.mrf.mxu0  ;;  %v867_v8 = vpop.permute.xlu1 %866 }
 0x218   :  { %v538_v20 = vpack.c.bf16 %v530_v18, %v529_v13  ;;  %v528_v21 = vmax.f32 %v512_v16, 0.0  ;;  %v1043_v63 = vpop.f32.mrf.mxu0  ;;  %v862_v9 = vpop.permute.xlu0 %861 }
 0x21a   :  { %v537_v25 = vpack.c.bf16 %v528_v21, %v527_v19  ;;  %1667 = vmatprep.subr.bf16.mxu1 %v538_v20  ;;  %v1720_v2 = vpop.f32.mrf.mxu0 }
 0x21b   :  { %1668 = vmatpush3.bf16.msra.mxu1 %v538_v20  ;;  %v857_v20 = vpop.permute.xlu1 %856  ;;  %v1055_v31 = vadd.f32 %v1720_v2, %v867_v8 }
 0x21c   :  { %1669 = vmatprep.subr.bf16.mxu1 %v537_v25  ;;  %v1046_v4 = vpop.f32.mrf.mxu0 }
 0x21e   :  { %v1723_v6 = vpop.f32.mrf.mxu0 }
 0x21f   :  { %1670 = vmatpush3.bf16.msra.mxu1 %v537_v25  ;;  %v1068_v17 = vadd.f32 %v1723_v6, %v882_v5  ;;  %v852_v25 = vpop.permute.xlu0 %851 }
 0x220   :  { %1671 = vmatprep.subr.bf16.mxu1 %v536_v29  ;;  %v1059_v12 = vpop.f32.mrf.mxu0 }
 0x221   :  { %v1088_v28 = vmax.f32 %v1068_v17, 0.0 }
 0x222   :  { %v1724_v10 = vpop.f32.mrf.mxu0 }
 0x223   :  { %1672 = vmatpush3.bf16.msra.mxu1 %v536_v29  ;;  %v1071_v15 = vadd.f32 %v1724_v10, %v887_v3  ;;  %v1060_v29 = vadd.f32 %v1059_v12, %v872_v11 }
 0x224   :  { %1673 = vmatprep.subr.bf16.mxu1 %v535_v32  ;;  %v1062_v18 = vpop.f32.mrf.mxu0 }
 0x225   :  { %v1089_v22 = vmax.f32 %v1071_v15, 0.0  ;;  %v1063_v23 = vadd.f32 %v1062_v18, %v877_v7 }
 0x227   :  { %1674 = vmatpush3.bf16.msra.mxu1 %v535_v32  ;;  %v1105_v32 = vpack.c.bf16 %v1089_v22, %v1088_v28 }
 0x228   :  { %1679 = vmatprep.subr.bf16.mxu1 %v1827_v34 }
 0x22a   :  { %1676 = vmatmul.mubr.msk.bf16.vlgmr.msra.gmra.mxu1 %vm573_vm1, %v1817_v33  ;;  %v1087_v33 = vmax.f32 %v1063_v23, 0.0 }
 0x22b   :  { %1683 = vmatprep.mubr.msk.bf16.mxu1 %vm1828_vm2, %v1827_v34 }
 0x2ea   :  { %v1677_v37 = vpop.f32.mrf.mxu1 }
 0x2eb   :  { %v623_v39 = vadd.f32 %v1677_v37, %v556_v35  ;;  %v847_v35 = vpop.permute.xlu1 %846  ;;  %v1819_v37 = vld [vmem:[%s2400_s3] sm:$0xff]  }
 0x2ec   :  { %v614_v38 = vpop.f32.mrf.mxu1 }
 0x2ed   :  { %v631_v45 = vmax.f32 %v623_v39, 0.0  ;;  %v615_v46 = vadd.f32 %v614_v38, %v546_v41  ;;  %v1052_v38 = vadd.f32 %v1719_v62, %v862_v9  ;;  %v1086_v39 = vmax.f32 %v1060_v29, 0.0 }
 0x2ee   :  { %v1678_v40 = vpop.f32.mrf.mxu1  ;;  %v1085_v41 = vmax.f32 %v1055_v31, 0.0 }
 0x2ef   :  { %v626_v42 = vadd.f32 %v1678_v40, %v561_v36  ;;  %v629_v55 = vmax.f32 %v615_v46, 0.0  ;;  %v700_v36 = vld [vmem:[%s2403_s6] sm:$0xf]  ;;  %v842_v40 = vpop.permute.xlu0 %841  ;;  %v837_v46 = vpop.permute.xlu1 %836 }
 0x2f0   :  { %v617_v44 = vpop.f32.mrf.mxu1  ;;  %v1031_v62 = vadd.f32 %v2336_v61, %v837_v46 }
 0x2f1   :  { %v632_v47 = vmax.f32 %v626_v42, 0.0  ;;  %v618_v48 = vadd.f32 %v617_v44, %v551_v43  ;;  %v1047_v42 = vadd.f32 %v1046_v4, %v857_v20  ;;  %v1104_v43 = vpack.c.bf16 %v1087_v33, %v1086_v39 }
 0x2f2   :  { %v1084_v44 = vmax.f32 %v1052_v38, 0.0  ;;  %v1079_v5 = vmax.f32 %v1031_v62, 0.0 }
 0x2f3   :  { %v636_v53 = vpack.c.bf16 %v632_v47, %v631_v45  ;;  %v630_v54 = vmax.f32 %v618_v48, 0.0  ;;  %v1044_v45 = vadd.f32 %v1043_v63, %v852_v25  ;;  %v1039_v47 = vadd.f32 %v1716_v60, %v847_v35 }
 0x2f4   :  { %v1103_v48 = vpack.c.bf16 %v1085_v41, %v1084_v44 }
 0x2f5   :  { %1680 = vmatpush3.bf16.msra.mxu1 %v636_v53  ;;  %v635_v56 = vpack.c.bf16 %v630_v54, %v629_v55  ;;  %v1083_v53 = vmax.f32 %v1047_v42, 0.0  ;;  %v832_v54 = vpop.permute.xlu0 %831  ;;  %v1036_v55 = vadd.f32 %v2332_v52, %v842_v40 }
 0x2f6   :  { %1681 = vmatprep.subr.bf16.mxu1 %v1827_v34  ;;  %v1028_v63 = vadd.f32 %v2334_v50, %v832_v54 }
 0x2f7   :  { %v1080_v2 = vmax.f32 %v1036_v55, 0.0 }
 0x2f8   :  { %v1078_v6 = vmax.f32 %v1028_v63, 0.0 }
 0x2f9   :  { %1682 = vmatpush3.bf16.msra.mxu1 %v635_v56  ;;  %v1082_v56 = vmax.f32 %v1044_v45, 0.0  ;;  %v822_v3 = vpop.permute.xlu0 %821 }
 0x2fa   :  { %1687 = vmatprep.subr.bf16.mxu1 %v1827_v34  ;;  %v1020_v52 = vadd.f32 %v2324_v51, %v822_v3  ;;  %v1100_v12 = vpack.c.bf16 %v1079_v5, %v1078_v6  ;;  %v1820_v51 = vld [vmem:[%s2400_s3 + $0x8] sm:$0xff]  }
 0x2fb   :  { %v1824_v5 = vld [vmem:[%s2401_s4 + $0x8] sm:$0xff]  }
 0x2fc   :  { %1684 = vmatmul.mubr.msk.bf16.vlgmr.msra.gmra.mxu1 %vm208_vm0, %v1818_v57  ;;  %v1081_v57 = vmax.f32 %v1039_v47, 0.0  ;;  %v1076_v10 = vmax.f32 %v1020_v52, 0.0 }
 0x2fd   :  { %1689 = vmatprep.mubr.msk.bf16.mxu1 %vm1828_vm2, %v1827_v34  ;;  %v812_v8 = vpop.permute.xlu0 %811 }
 0x2fe   :  { %v1101_v4 = vpack.c.bf16 %v1081_v57, %v1080_v2  ;;  %v1012_v50 = vadd.f32 %v2326_v58, %v812_v8  ;;  %v1822_v58 = vld [vmem:[%s2400_s3 + $0x18] sm:$0xff]  }
 0x300   :  { %v1074_v9 = vmax.f32 %v1012_v50, 0.0 }
 0x301   :  { %v1147_v18 = vpop.permute.xlu0 %1146 }
 0x3bc   :  { %v691_v14 = vpop.f32.mrf.mxu1 }
 0x3bd   :  { %v692_v16 = vadd.f32 %v691_v14, %v642_v1  ;;  %v827_v1 = vpop.permute.xlu1 %826 }
 0x3be   :  { %v1685_v13 = vpop.f32.mrf.mxu1  ;;  %v1023_v60 = vadd.f32 %v2328_v59, %v827_v1 }
 0x3bf   :  { %v698_v26 = vmax.f32 %v692_v16, 0.0  ;;  %v1823_v13 = vld [vmem:[%s2401_s4] sm:$0xff]   ;;  %v1137_v16 = vpop.permute.xlu0 %1136 }
 0x3c0   :  { %v694_v19 = vpop.f32.mrf.mxu1  ;;  %v1077_v11 = vmax.f32 %v1023_v60, 0.0 }
 0x3c1   :  { %v695_v21 = vadd.f32 %v694_v19, %v647_v0  ;;  %v1102_v0 = vpack.c.bf16 %v1083_v53, %v1082_v56  ;;  %v817_v7 = vpop.permute.xlu1 %816 }
 0x3c2   :  { %v1686_v24 = vpop.f32.mrf.mxu1  ;;  %v1015_v61 = vadd.f32 %v2330_v49, %v817_v7  ;;  %v1099_v14 = vpack.c.bf16 %v1077_v11, %v1076_v10  ;;  %v1821_v49 = vld [vmem:[%s2400_s3 + $0x10] sm:$0xff]  }
 0x3c3   :  { %v699_v27 = vmax.f32 %v695_v21, 0.0  ;;  %v1127_v17 = vpop.permute.xlu0 %1126 }
 0x3c4   :  { %v1075_v59 = vmax.f32 %v1015_v61, 0.0 }
 0x3c5   :  { %v701_v30 = vpack.c.bf16 %v699_v27, %v698_v26  ;;  %v1152_v29 = vpop.permute.xlu1 %1151 }
 0x3c6   :  { %v1098_v15 = vpack.c.bf16 %v1075_v59, %v1074_v9 }
 0x3c7   :  { %1688 = vmatpush3.bf16.msra.mxu1 %v701_v30  ;;  %v1117_v19 = vpop.permute.xlu0 %1116 }
 0x3c8   :  { %1725 = vmatprep.subr.bf16.mxu1 %v1105_v32 }
 0x3c9   :  { %v1142_v33 = vpop.permute.xlu1 %1141 }
 0x3ca   :  { %1690 = vmatmul.mubr.msk.bf16.vlgmr.msra.gmra.mxu1 %vm708_vm3, %v700_v36 }
 0x3cb   :  { %1726 = vmatpush3.bf16.msra.mxu1 %v1105_v32  ;;  %1741 = vmatprep.mubr.bf16.mxu1 %v1819_v37  ;;  %v1276_v20 = vpop.permute.xlu0 %1275 }
 0x3cc   :  { %1727 = vmatprep.subr.bf16.mxu1 %v1104_v43 }
 0x3cd   :  { %v1132_v39 = vpop.permute.xlu1 %1131 }
 0x3cf   :  { %1728 = vmatpush3.bf16.msra.mxu1 %v1104_v43  ;;  %v2365_v21 = vpop.permute.xlu0 %1265 }
 0x3d0   :  { %1729 = vmatprep.subr.bf16.mxu1 %v1103_v48 }
 0x3d1   :  { %v1122_v56 = vpop.permute.xlu1 %1121 }
 0x3d3   :  { %1730 = vmatpush3.bf16.msra.mxu1 %v1103_v48  ;;  %v2367_v22 = vpop.permute.xlu0 %1360 }
 0x3d4   :  { %1731 = vmatprep.subr.bf16.mxu1 %v1102_v0 }
 0x3d5   :  { %v1281_v52 = vpop.permute.xlu1 %1280 }
 0x3d7   :  { %1732 = vmatpush3.bf16.msra.mxu1 %v1102_v0  ;;  %v706_v23 = vpop.permute.xlu0 %705 }
 0x3d8   :  { %1733 = vmatprep.subr.bf16.mxu1 %v1101_v4 }
 0x3d9   :  { %v1271_v8 = vpop.permute.xlu1 %1270 }
 0x3db   :  { %1734 = vmatpush3.bf16.msra.mxu1 %v1101_v4 }
 0x3dc   :  { %1735 = vmatprep.subr.bf16.mxu1 %v1100_v12 }
 0x3df   :  { %1736 = vmatpush3.bf16.msra.mxu1 %v1100_v12 }
 0x3e0   :  { %1737 = vmatprep.subr.bf16.mxu1 %v1099_v14 }
 0x3e3   :  { %1738 = vmatpush3.bf16.msra.mxu1 %v1099_v14 }
 0x3e4   :  { %1739 = vmatprep.subr.bf16.mxu1 %v1098_v15 }
 0x3e7   :  { %1740 = vmatpush3.bf16.msra.mxu1 %v1098_v15 }
 0x3ea   :  { %1742 = vmatmul.mubr.bf16.vlgmr.msra.gmra.mxu1 %v1820_v51 }
 0x3eb   :  { %1745 = vmatprep.mubr.bf16.mxu1 %v1821_v49 }
 0x3f2   :  { %1746 = vmatmul.mubr.bf16.gmra.mxu1 %v1822_v58 }
 0x3f3   :  { %1757 = vmatprep.mubr.msk.bf16.mxu1 %vm573_vm1, %v1823_v13  ;;  %v1825_v13 = vld [vmem:[%s2402_s5] sm:$0xff]  }
 0x48a   :  { %v746_v24 = vpop.f32.mrf.mxu1 }
 0x48b   :  { %v747_v25 = vadd.f32 %v746_v24, %v706_v23 }
 0x48c   :  { %v1691_v26 = vpop.f32.mrf.mxu1 }
 0x48d   :  { %752 = vst [vmem:[%s2404_s8] sm:$0xff] %v747_v25 }
 0x48e   :  { %v749_v27 = vpop.f32.mrf.mxu1 }
 0x48f   :  { %v1419_v27 = vld [vmem:[%s2403_s6] sm:$0xf] }
 0x490   :  { %v1692_v28 = vpop.f32.mrf.mxu1 }
 0x4aa   :  { %v1743_v30 = vpop.f32.mrf.mxu1 }
 0x4ab   :  { %v1221_v48 = vadd.f32 %v1743_v30, %v1127_v17 }
 0x4ac   :  { %v1212_v31 = vpop.f32.mrf.mxu1 }
 0x4ad   :  { %v1245_v1 = vmax.f32 %v1221_v48, 0.0  ;;  %v1213_v2 = vadd.f32 %v1212_v31, %v1117_v19  ;;  %v1366_v19 = vpop.permute.xlu1 %1365 }
 0x4ae   :  { %v1744_v32 = vpop.f32.mrf.mxu1 }
 0x4af   :  { %v1224_v44 = vadd.f32 %v1744_v32, %v1132_v39  ;;  %v1243_v60 = vmax.f32 %v1213_v2, 0.0 }
 0x4b0   :  { %v1215_v35 = vpop.f32.mrf.mxu1 }
 0x4b1   :  { %v1246_v57 = vmax.f32 %v1224_v44, 0.0  ;;  %v1216_v62 = vadd.f32 %v1215_v35, %v1122_v56  ;;  %v1425_v28 = vpop.permute.xlu1 %1424 }
 0x4b2   :  { %v1747_v36 = vpop.f32.mrf.mxu1 }
 0x4b3   :  { %v1237_v38 = vadd.f32 %v1747_v36, %v1147_v18  ;;  %v1256_v63 = vpack.c.bf16 %v1246_v57, %v1245_v1  ;;  %v1244_v3 = vmax.f32 %v1216_v62, 0.0 }
 0x4b4   :  { %v1228_v37 = vpop.f32.mrf.mxu1 }
 0x4b5   :  { %v1229_v41 = vadd.f32 %v1228_v37, %v1137_v16  ;;  %v1249_v45 = vmax.f32 %v1237_v38, 0.0  ;;  %v1255_v4 = vpack.c.bf16 %v1244_v3, %v1243_v60 }
 0x4b6   :  { %v1748_v40 = vpop.f32.mrf.mxu1 }
 0x4b7   :  { %v1240_v42 = vadd.f32 %v1748_v40, %v1152_v29  ;;  %v1247_v53 = vmax.f32 %v1229_v41, 0.0 }
 0x4b8   :  { %v1231_v43 = vpop.f32.mrf.mxu1 }
 0x4b9   :  { %v1250_v46 = vmax.f32 %v1240_v42, 0.0  ;;  %v1232_v47 = vadd.f32 %v1231_v43, %v1142_v33 }
 0x4bb   :  { %v1258_v54 = vpack.c.bf16 %v1250_v46, %v1249_v45  ;;  %v1248_v55 = vmax.f32 %v1232_v47, 0.0 }
 0x4bd   :  { %v1257_v0 = vpack.c.bf16 %v1248_v55, %v1247_v53  ;;  %1749 = vmatprep.subr.bf16.mxu1 %v1258_v54 }
 0x4be   :  { %1750 = vmatpush3.bf16.msra.mxu1 %v1258_v54 }
 0x4bf   :  { %1751 = vmatprep.subr.bf16.mxu1 %v1257_v0 }
 0x4c2   :  { %1752 = vmatpush3.bf16.msra.mxu1 %v1257_v0 }
 0x4c3   :  { %1753 = vmatprep.subr.bf16.mxu1 %v1256_v63 }
 0x4c6   :  { %1754 = vmatpush3.bf16.msra.mxu1 %v1256_v63 }
 0x4c7   :  { %1755 = vmatprep.subr.bf16.mxu1 %v1255_v4 }
 0x4ca   :  { %1756 = vmatpush3.bf16.msra.mxu1 %v1255_v4 }
 0x4cb   :  { %1761 = vmatprep.subr.bf16.mxu1 %v1827_v34 }
 0x4cd   :  { %1758 = vmatmul.mubr.msk.bf16.vlgmr.msra.gmra.mxu1 %vm573_vm1, %v1824_v5 }
 0x4ce   :  { %1765 = vmatprep.mubr.msk.bf16.mxu1 %vm1828_vm2, %v1827_v34 }
 0x58d   :  { %v1759_v6 = vpop.f32.mrf.mxu1 }
 0x58e   :  { %v1342_v11 = vadd.f32 %v1759_v6, %v1276_v20 }
 0x58f   :  { %v1333_v7 = vpop.f32.mrf.mxu1 }
 0x590   :  { %v1350_v50 = vmax.f32 %v1342_v11, 0.0  ;;  %v1334_v14 = vadd.f32 %v1333_v7, %v2365_v21 }
 0x591   :  { %v1760_v61 = vpop.f32.mrf.mxu1 }
 0x592   :  { %v1345_v12 = vadd.f32 %v1760_v61, %v1281_v52  ;;  %v1348_v49 = vmax.f32 %v1334_v14, 0.0 }
 0x593   :  { %v1336_v10 = vpop.f32.mrf.mxu1 }
 0x594   :  { %v1351_v59 = vmax.f32 %v1345_v12, 0.0  ;;  %v1337_v9 = vadd.f32 %v1336_v10, %v1271_v8 }
 0x596   :  { %v1355_v15 = vpack.c.bf16 %v1351_v59, %v1350_v50  ;;  %v1349_v51 = vmax.f32 %v1337_v9, 0.0 }
 0x598   :  { %1762 = vmatpush3.bf16.msra.mxu1 %v1355_v15  ;;  %v1354_v58 = vpack.c.bf16 %v1349_v51, %v1348_v49 }
 0x599   :  { %1763 = vmatprep.subr.bf16.mxu1 %v1827_v34 }
 0x59c   :  { %1764 = vmatpush3.bf16.msra.mxu1 %v1354_v58 }
 0x59d   :  { %1769 = vmatprep.subr.bf16.mxu1 %v1827_v34 }
 0x59f   :  { %1766 = vmatmul.mubr.msk.bf16.vlgmr.msra.gmra.mxu1 %vm208_vm0, %v1825_v13 }
 0x5a0   :  { %1771 = vmatprep.mubr.msk.bf16.mxu1 %vm1828_vm2, %v1827_v34 }
 0x65f   :  { %v1410_v18 = vpop.f32.mrf.mxu1 }
 0x660   :  { %v1411_v17 = vadd.f32 %v1410_v18, %v2367_v22 }
 0x661   :  { %v1767_v16 = vpop.f32.mrf.mxu1 }
 0x662   :  { %v1417_v24 = vmax.f32 %v1411_v17, 0.0 }
 0x663   :  { %v1413_v20 = vpop.f32.mrf.mxu1 }
 0x664   :  { %v1414_v21 = vadd.f32 %v1413_v20, %v1366_v19 }
 0x665   :  { %v1768_v23 = vpop.f32.mrf.mxu1 }
 0x666   :  { %v1418_v25 = vmax.f32 %v1414_v21, 0.0 }
 0x668   :  { %v1420_v26 = vpack.c.bf16 %v1418_v25, %v1417_v24 }
 0x66a   :  { %1770 = vmatpush3.bf16.msra.mxu1 %v1420_v26 }
 0x66d   :  { %1772 = vmatmul.mubr.msk.bf16.vlgmr.msra.gmra.mxu1 %vm708_vm3, %v1419_v27 }
 0x72d   :  { %v1464_v34 = vpop.f32.mrf.mxu1 }
 0x72e   :  { %v1465_v29 = vadd.f32 %v1464_v34, %v1425_v28 }
 0x72f   :  { %v1773_v30 = vpop.f32.mrf.mxu1 }
 0x730   :  { %1470 = vst [vmem:[%s2405_s9] sm:$0xff] %v1465_v29 }
 0x731   :  { %v1467_v22 = vpop.f32.mrf.mxu1 }
 0x733   :  { %v1774_v31 = vpop.f32.mrf.mxu1 }

</bundles_post_ra>
